<compile_context>
chip_gen: v7x
topology: tpu7x:2x2x1
jax: 0.10.0
libtpu: 0.0.40
codegen_flags: <defaults>
</compile_context>

<pallas_src>
import functools
import math

import jax
import jax.numpy as jnp
from jax import lax
from jax.experimental import pallas as pl
from jax.experimental.pallas import tpu as pltpu


# ----------------------------------------------------------------------------
# Kernel: one (batch, query-tile) block per grid point
# ----------------------------------------------------------------------------
def attention_kernel(n_heads, q_ref, k_ref, v_ref, mask_ref, w_ref, b_ref, o_ref):
    tq, D = q_ref.shape[1], q_ref.shape[2]
    S = k_ref.shape[1]
    hd = D // n_heads
    inv_scale = 1.0 / math.sqrt(float(D))  # torch divides by sqrt(hid_dim)

    f32 = jnp.float32
    bf16 = jnp.bfloat16

    q = q_ref[0].astype(bf16)          # (tq, D)
    k = k_ref[0].astype(bf16)          # (S, D)
    v = v_ref[0].astype(bf16)          # (S, D)

    wq, wk, wv, wz = w_ref[0], w_ref[1], w_ref[2], w_ref[3]   # (D, D) bf16
    bq, bk, bv, bz = b_ref[0], b_ref[1], b_ref[2], b_ref[3]   # (1, D) f32

    # lane-dense projections: bf16 inputs, f32 accumulation
    Q = jnp.dot(q, wq, preferred_element_type=f32) + bq       # (tq, D)
    K = jnp.dot(k, wk, preferred_element_type=f32) + bk       # (S, D)
    V = jnp.dot(v, wv, preferred_element_type=f32) + bv       # (S, D)

    # split heads once: (len, D) -> (n_heads, len, hd); all heads handled by a
    # single batched contraction (no per-head Python loop / masked sub-lane store)
    Qh = Q.reshape(tq, n_heads, hd).transpose(1, 0, 2).astype(bf16)   # (H, tq, hd)
    Kh = K.reshape(S, n_heads, hd).transpose(1, 0, 2).astype(bf16)    # (H, S, hd)
    Vh = V.reshape(S, n_heads, hd).transpose(1, 0, 2).astype(bf16)    # (H, S, hd)

    # scores[h, i, j] = <Qh[h, i], Kh[h, j]> / sqrt(hid_dim)
    scores = lax.dot_general(
        Qh, Kh, (((2,), (2,)), ((0,), (0,))),
        preferred_element_type=f32) * inv_scale                       # (H, tq, S)

    # key-padding mask (B,1,1,S) -> broadcast over heads & query positions
    m = mask_ref[...].reshape(1, S)
    scores = jnp.where(m[None, :, :] == 0.0, -1e10, scores)

    # numerically-stable softmax in f32 (dropout is identity in eval mode)
    smax = jnp.max(scores, axis=-1, keepdims=True)
    p = jnp.exp(scores - smax)
    attn = p * pl.reciprocal(jnp.sum(p, axis=-1, keepdims=True), approx=True)

    # ctx[h, i, :] = attn[h, i, :] @ Vh[h]
    ctx = lax.dot_general(
        attn.astype(bf16), Vh, (((2,), (1,)), ((0,), (0,))),
        preferred_element_type=f32)                                   # (H, tq, hd)

    # merge heads in registers, apply Z projection, single lane-dense store
    ctx = ctx.transpose(1, 0, 2).reshape(tq, D)
    out = jnp.dot(ctx.astype(bf16), wz, preferred_element_type=f32) + bz
    o_ref[0] = out.astype(o_ref.dtype)


# ----------------------------------------------------------------------------
# Wrapper
# ----------------------------------------------------------------------------
def multi_head_attention(q, k, v, mask, params, n_heads, *, q_tile=128):
    B, S, D = q.shape
    assert D % n_heads == 0

    if mask is None:
        mask = jnp.ones((B, 1, 1, S), jnp.float32)
    mask = mask.astype(jnp.float32).reshape(B, 1, 1, S)

    # stack weights (pre-transposed to (in, out), bf16) and biases (f32)
    w = jnp.stack([params['wq'], params['wk'],
                   params['wv'], params['wz']]).astype(jnp.bfloat16)   # (4, D, D)
    b = jnp.stack([params['bq'], params['bk'],
                   params['bv'], params['bz']]).astype(jnp.float32)    # (4, 1, D)

    tq = q_tile if (S % q_tile == 0) else S
    grid = (B, S // tq)

    kernel = functools.partial(attention_kernel, n_heads)

    return pl.pallas_call(
        kernel,
        out_shape=jax.ShapeDtypeStruct((B, S, D), q.dtype),
        grid_spec=pltpu.PrefetchScalarGridSpec(
            num_scalar_prefetch=0,
            grid=grid,
            in_specs=[
                pl.BlockSpec((1, tq, D), lambda bi, qi: (bi, qi, 0)),       # q
                pl.BlockSpec((1, S, D), lambda bi, qi: (bi, 0, 0)),         # k
                pl.BlockSpec((1, S, D), lambda bi, qi: (bi, 0, 0)),         # v
                pl.BlockSpec((1, 1, 1, S), lambda bi, qi: (bi, 0, 0, 0)),   # mask
                pl.BlockSpec((4, D, D), lambda bi, qi: (0, 0, 0)),          # weights (resident)
                pl.BlockSpec((4, 1, D), lambda bi, qi: (0, 0, 0)),          # biases  (resident)
            ],
            out_specs=pl.BlockSpec((1, tq, D), lambda bi, qi: (bi, qi, 0)),
        ),
        compiler_params=pltpu.CompilerParams(
            dimension_semantics=("parallel", "parallel"),
            vmem_limit_bytes=48 * 1024 * 1024,
        ),
    )(q, k, v, mask, w, b)


# ----------------------------------------------------------------------------
# Pure-JAX reference (f32) for a sanity check
# ----------------------------------------------------------------------------
def attention_reference(q, k, v, mask, params, n_heads):
    B, S, D = q.shape
    hd = D // n_heads
    Q = q @ params['wq'] + params['bq']
    K = k @ params['wk'] + params['bk']
    V = v @ params['wv'] + params['bv']
    Q = Q.reshape(B, S, n_heads, hd).transpose(0, 2, 1, 3)
    K = K.reshape(B, S, n_heads, hd).transpose(0, 2, 1, 3)
    V = V.reshape(B, S, n_heads, hd).transpose(0, 2, 1, 3)
    scores = jnp.einsum('bhqd,bhkd->bhqk', Q, K) / math.sqrt(D)
    scores = jnp.where(mask.reshape(B, 1, 1, S) == 0.0, -1e10, scores)
    attn = jax.nn.softmax(scores, axis=-1)
    ctx = jnp.einsum('bhqk,bhkd->bhqd', attn, V)
    ctx = ctx.transpose(0, 2, 1, 3).reshape(B, S, D)
    return ctx @ params['wz'] + params['bz']


def init_params(key, hid_dim, scale=0.1):
    ks = jax.random.split(key, 8)
    p = {}
    for i, nm in enumerate(('q', 'k', 'v', 'z')):
        p['w' + nm] = jax.random.normal(ks[2 * i], (hid_dim, hid_dim), jnp.float32) * scale
        p['b' + nm] = jax.random.normal(ks[2 * i + 1], (1, hid_dim), jnp.float32) * scale
    return p


if __name__ == "__main__":
    B, S, HID, HEADS = 2, 8, 32, 4

    key = jax.random.PRNGKey(0)
    kq, kk, kv, kp = jax.random.split(key, 4)
    params = init_params(kp, HID)

    q = jax.random.normal(kq, (B, S, HID), jnp.float32)
    k = jax.random.normal(kk, (B, S, HID), jnp.float32)
    v = jax.random.normal(kv, (B, S, HID), jnp.float32)

    # key-padding mask like the parent model: (B, 1, 1, S), 1 where token valid
    lengths = jnp.array([8, 5], jnp.int32)
    pos = jnp.arange(S, dtype=jnp.int32)[None, :]
    mask = (pos < lengths[:, None]).astype(jnp.float32).reshape(B, 1, 1, S)

    out = multi_head_attention(q, k, v, mask, params, HEADS)
    out = jax.block_until_ready(out)
    assert out.shape == (B, S, HID)

    ref = attention_reference(q, k, v, mask, params, HEADS)
    err = float(jnp.max(jnp.abs(out - ref)))
    assert err < 5e-2, f"max abs err {err}"

    print("KERNEL_OK")
</pallas_src>

<mosaic_0001>
module attributes {stable_mosaic.version = 11 : i64} {
  func.func @attention_kernel(%arg0: i32, %arg1: i32, %arg2: memref<1x8x32xf32, #tpu.memory_space<vmem>>, %arg3: memref<1x8x32xf32, #tpu.memory_space<vmem>>, %arg4: memref<1x8x32xf32, #tpu.memory_space<vmem>>, %arg5: memref<1x1x1x8xf32, #tpu.memory_space<vmem>>, %arg6: memref<4x32x32xbf16, #tpu.memory_space<vmem>>, %arg7: memref<4x1x32xf32, #tpu.memory_space<vmem>>, %arg8: memref<1x8x32xf32, #tpu.memory_space<vmem>>) attributes {dimension_semantics = [#tpu.dimension_semantics<parallel>, #tpu.dimension_semantics<parallel>], iteration_bounds = array<i64: 2, 1>, scalar_prefetch = 0 : i64, scratch_operands = 0 : i64, tpu.core_type = #tpu.core_type<tc>, window_params = [{transform_indices = @transform_0, window_bounds = array<i64: 1, 8, 32>}, {transform_indices = @transform_1, window_bounds = array<i64: 1, 8, 32>}, {transform_indices = @transform_2, window_bounds = array<i64: 1, 8, 32>}, {transform_indices = @transform_3, window_bounds = array<i64: 1, 1, 1, 8>}, {pipeline_mode = #tpu.pipeline_mode<synchronous>, transform_indices = @transform_4, window_bounds = array<i64: 4, 32, 32>}, {pipeline_mode = #tpu.pipeline_mode<synchronous>, transform_indices = @transform_5, window_bounds = array<i64: 4, 1, 32>}, {transform_indices = @transform_6, window_bounds = array<i64: 1, 8, 32>}]} {
    %c0 = arith.constant 0 : index
    %c0_0 = arith.constant 0 : index
    %c0_1 = arith.constant 0 : index
    %0 = vector.load %arg2[%c0, %c0_0, %c0_1] : memref<1x8x32xf32, #tpu.memory_space<vmem>>, vector<1x8x32xf32>
    %1 = vector.shape_cast %0 : vector<1x8x32xf32> to vector<8x32xf32>
    %2 = arith.truncf %1 : vector<8x32xf32> to vector<8x32xbf16>
    %c0_2 = arith.constant 0 : index
    %c0_3 = arith.constant 0 : index
    %c0_4 = arith.constant 0 : index
    %3 = vector.load %arg3[%c0_2, %c0_3, %c0_4] : memref<1x8x32xf32, #tpu.memory_space<vmem>>, vector<1x8x32xf32>
    %4 = vector.shape_cast %3 : vector<1x8x32xf32> to vector<8x32xf32>
    %5 = arith.truncf %4 : vector<8x32xf32> to vector<8x32xbf16>
    %c0_5 = arith.constant 0 : index
    %c0_6 = arith.constant 0 : index
    %c0_7 = arith.constant 0 : index
    %6 = vector.load %arg4[%c0_5, %c0_6, %c0_7] : memref<1x8x32xf32, #tpu.memory_space<vmem>>, vector<1x8x32xf32>
    %7 = vector.shape_cast %6 : vector<1x8x32xf32> to vector<8x32xf32>
    %8 = arith.truncf %7 : vector<8x32xf32> to vector<8x32xbf16>
    %c0_8 = arith.constant 0 : index
    %c0_9 = arith.constant 0 : index
    %c0_10 = arith.constant 0 : index
    %9 = vector.load %arg6[%c0_8, %c0_9, %c0_10] : memref<4x32x32xbf16, #tpu.memory_space<vmem>>, vector<1x32x32xbf16>
    %10 = vector.shape_cast %9 : vector<1x32x32xbf16> to vector<32x32xbf16>
    %c1 = arith.constant 1 : index
    %c0_11 = arith.constant 0 : index
    %c0_12 = arith.constant 0 : index
    %11 = vector.load %arg6[%c1, %c0_11, %c0_12] : memref<4x32x32xbf16, #tpu.memory_space<vmem>>, vector<1x32x32xbf16>
    %12 = vector.shape_cast %11 : vector<1x32x32xbf16> to vector<32x32xbf16>
    %c2 = arith.constant 2 : index
    %c0_13 = arith.constant 0 : index
    %c0_14 = arith.constant 0 : index
    %13 = vector.load %arg6[%c2, %c0_13, %c0_14] : memref<4x32x32xbf16, #tpu.memory_space<vmem>>, vector<1x32x32xbf16>
    %14 = vector.shape_cast %13 : vector<1x32x32xbf16> to vector<32x32xbf16>
    %c3 = arith.constant 3 : index
    %c0_15 = arith.constant 0 : index
    %c0_16 = arith.constant 0 : index
    %15 = vector.load %arg6[%c3, %c0_15, %c0_16] : memref<4x32x32xbf16, #tpu.memory_space<vmem>>, vector<1x32x32xbf16>
    %16 = vector.shape_cast %15 : vector<1x32x32xbf16> to vector<32x32xbf16>
    %c0_17 = arith.constant 0 : index
    %c0_18 = arith.constant 0 : index
    %c0_19 = arith.constant 0 : index
    %17 = vector.load %arg7[%c0_17, %c0_18, %c0_19] : memref<4x1x32xf32, #tpu.memory_space<vmem>>, vector<1x1x32xf32>
    %18 = vector.shape_cast %17 : vector<1x1x32xf32> to vector<1x32xf32>
    %c1_20 = arith.constant 1 : index
    %c0_21 = arith.constant 0 : index
    %c0_22 = arith.constant 0 : index
    %19 = vector.load %arg7[%c1_20, %c0_21, %c0_22] : memref<4x1x32xf32, #tpu.memory_space<vmem>>, vector<1x1x32xf32>
    %20 = vector.shape_cast %19 : vector<1x1x32xf32> to vector<1x32xf32>
    %c2_23 = arith.constant 2 : index
    %c0_24 = arith.constant 0 : index
    %c0_25 = arith.constant 0 : index
    %21 = vector.load %arg7[%c2_23, %c0_24, %c0_25] : memref<4x1x32xf32, #tpu.memory_space<vmem>>, vector<1x1x32xf32>
    %22 = vector.shape_cast %21 : vector<1x1x32xf32> to vector<1x32xf32>
    %c3_26 = arith.constant 3 : index
    %c0_27 = arith.constant 0 : index
    %c0_28 = arith.constant 0 : index
    %23 = vector.load %arg7[%c3_26, %c0_27, %c0_28] : memref<4x1x32xf32, #tpu.memory_space<vmem>>, vector<1x1x32xf32>
    %24 = vector.shape_cast %23 : vector<1x1x32xf32> to vector<1x32xf32>
    %cst = arith.constant dense<0.000000e+00> : vector<8x32xf32>
    %25 = tpu.matmul %2, %10, %cst {dimension_numbers = #tpu.dot_dimension_numbers<[1], [0], [0], [1], [0, 0, 1, 1], [], []>} : vector<8x32xbf16>, vector<32x32xbf16>, vector<8x32xf32> -> vector<8x32xf32>
    %26 = vector.broadcast %18 : vector<1x32xf32> to vector<8x32xf32>
    %27 = arith.addf %25, %26 : vector<8x32xf32>
    %cst_29 = arith.constant dense<0.000000e+00> : vector<8x32xf32>
    %28 = tpu.matmul %5, %12, %cst_29 {dimension_numbers = #tpu.dot_dimension_numbers<[1], [0], [0], [1], [0, 0, 1, 1], [], []>} : vector<8x32xbf16>, vector<32x32xbf16>, vector<8x32xf32> -> vector<8x32xf32>
    %29 = vector.broadcast %20 : vector<1x32xf32> to vector<8x32xf32>
    %30 = arith.addf %28, %29 : vector<8x32xf32>
    %cst_30 = arith.constant dense<0.000000e+00> : vector<8x32xf32>
    %31 = tpu.matmul %8, %14, %cst_30 {dimension_numbers = #tpu.dot_dimension_numbers<[1], [0], [0], [1], [0, 0, 1, 1], [], []>} : vector<8x32xbf16>, vector<32x32xbf16>, vector<8x32xf32> -> vector<8x32xf32>
    %32 = vector.broadcast %22 : vector<1x32xf32> to vector<8x32xf32>
    %33 = arith.addf %31, %32 : vector<8x32xf32>
    %34 = vector.shape_cast %27 : vector<8x32xf32> to vector<8x4x8xf32>
    %35 = tpu.transpose %34, [1, 0, 2] : vector<8x4x8xf32> -> vector<4x8x8xf32>
    %36 = arith.truncf %35 : vector<4x8x8xf32> to vector<4x8x8xbf16>
    %37 = vector.shape_cast %30 : vector<8x32xf32> to vector<8x4x8xf32>
    %38 = tpu.transpose %37, [1, 0, 2] : vector<8x4x8xf32> -> vector<4x8x8xf32>
    %39 = arith.truncf %38 : vector<4x8x8xf32> to vector<4x8x8xbf16>
    %40 = vector.shape_cast %33 : vector<8x32xf32> to vector<8x4x8xf32>
    %41 = tpu.transpose %40, [1, 0, 2] : vector<8x4x8xf32> -> vector<4x8x8xf32>
    %42 = arith.truncf %41 : vector<4x8x8xf32> to vector<4x8x8xbf16>
    %cst_31 = arith.constant dense<0.000000e+00> : vector<4x8x8xf32>
    %43 = tpu.matmul %36, %39, %cst_31 {dimension_numbers = #tpu.dot_dimension_numbers<[2], [2], [1], [1], [0, 0, 0, 1, 1, 1], [0], [0]>} : vector<4x8x8xbf16>, vector<4x8x8xbf16>, vector<4x8x8xf32> -> vector<4x8x8xf32>
    %cst_32 = arith.constant 0.176776692 : f32
    %44 = vector.broadcast %cst_32 : f32 to vector<4x8x8xf32>
    %45 = arith.mulf %43, %44 : vector<4x8x8xf32>
    %c0_33 = arith.constant 0 : index
    %c0_34 = arith.constant 0 : index
    %c0_35 = arith.constant 0 : index
    %c0_36 = arith.constant 0 : index
    %46 = vector.load %arg5[%c0_33, %c0_34, %c0_35, %c0_36] : memref<1x1x1x8xf32, #tpu.memory_space<vmem>>, vector<1x1x1x8xf32>
    %47 = vector.shape_cast %46 : vector<1x1x1x8xf32> to vector<1x8xf32>
    %48 = vector.shape_cast %47 : vector<1x8xf32> to vector<1x1x8xf32>
    %cst_37 = arith.constant 0.000000e+00 : f32
    %49 = vector.broadcast %cst_37 : f32 to vector<1x1x8xf32>
    %50 = arith.cmpf oeq, %48, %49 : vector<1x1x8xf32>
    %cst_38 = arith.constant -1.000000e+10 : f32
    %51 = vector.shape_cast %50 : vector<1x1x8xi1> to vector<1x1x8xi1>
    %52 = vector.broadcast %51 : vector<1x1x8xi1> to vector<4x8x8xi1>
    %53 = vector.broadcast %cst_38 : f32 to vector<4x8x8xf32>
    %54 = arith.select %52, %53, %45 : vector<4x8x8xi1>, vector<4x8x8xf32>
    %cst_39 = arith.constant dense<0xFF800000> : vector<4x8xf32>
    %55 = vector.multi_reduction <maximumf>, %54, %cst_39 [2] : vector<4x8x8xf32> to vector<4x8xf32>
    %56 = vector.shape_cast %55 : vector<4x8xf32> to vector<4x8x1xf32>
    %57 = vector.broadcast %56 : vector<4x8x1xf32> to vector<4x8x8xf32>
    %58 = arith.subf %54, %57 : vector<4x8x8xf32>
    %59 = math.exp %58 : vector<4x8x8xf32>
    %cst_40 = arith.constant dense<0.000000e+00> : vector<4x8xf32>
    %60 = vector.multi_reduction <add>, %59, %cst_40 [2] : vector<4x8x8xf32> to vector<4x8xf32>
    %61 = vector.shape_cast %60 : vector<4x8xf32> to vector<4x8x1xf32>
    %62 = tpu.reciprocal %61 {approx = true} : vector<4x8x1xf32> -> vector<4x8x1xf32>
    %63 = vector.broadcast %62 : vector<4x8x1xf32> to vector<4x8x8xf32>
    %64 = arith.mulf %59, %63 : vector<4x8x8xf32>
    %65 = arith.truncf %64 : vector<4x8x8xf32> to vector<4x8x8xbf16>
    %cst_41 = arith.constant dense<0.000000e+00> : vector<4x8x8xf32>
    %66 = tpu.matmul %65, %42, %cst_41 {dimension_numbers = #tpu.dot_dimension_numbers<[2], [1], [1], [2], [0, 0, 0, 1, 1, 2], [0], [0]>} : vector<4x8x8xbf16>, vector<4x8x8xbf16>, vector<4x8x8xf32> -> vector<4x8x8xf32>
    %67 = tpu.transpose %66, [1, 0, 2] : vector<4x8x8xf32> -> vector<8x4x8xf32>
    %68 = vector.shape_cast %67 : vector<8x4x8xf32> to vector<8x32xf32>
    %69 = arith.truncf %68 : vector<8x32xf32> to vector<8x32xbf16>
    %cst_42 = arith.constant dense<0.000000e+00> : vector<8x32xf32>
    %70 = tpu.matmul %69, %16, %cst_42 {dimension_numbers = #tpu.dot_dimension_numbers<[1], [0], [0], [1], [0, 0, 1, 1], [], []>} : vector<8x32xbf16>, vector<32x32xbf16>, vector<8x32xf32> -> vector<8x32xf32>
    %71 = vector.broadcast %24 : vector<1x32xf32> to vector<8x32xf32>
    %72 = arith.addf %70, %71 : vector<8x32xf32>
    %c0_43 = arith.constant 0 : index
    %c0_44 = arith.constant 0 : index
    %c0_45 = arith.constant 0 : index
    %73 = vector.load %arg8[%c0_43, %c0_44, %c0_45] : memref<1x8x32xf32, #tpu.memory_space<vmem>>, vector<1x8x32xf32>
    %74 = vector.shape_cast %73 : vector<1x8x32xf32> to vector<8x32xf32>
    %75 = vector.shape_cast %72 : vector<8x32xf32> to vector<1x8x32xf32>
    tpu.vector_store %arg8[%c0_43, %c0_44, %c0_45], %75 {strides = array<i32>} : memref<1x8x32xf32, #tpu.memory_space<vmem>>, vector<1x8x32xf32>,
    return
  }
  func.func @transform_0(%arg0: i32, %arg1: i32) -> (i32, i32, i32) {
    %c0_i32 = arith.constant 0 : i32
    %c0_i32_0 = arith.constant 0 : i32
    return %arg0, %arg1, %c0_i32 : i32, i32, i32
  }
  func.func @transform_1(%arg0: i32, %arg1: i32) -> (i32, i32, i32) {
    %c0_i32 = arith.constant 0 : i32
    %c0_i32_0 = arith.constant 0 : i32
    %c0_i32_1 = arith.constant 0 : i32
    return %arg0, %c0_i32, %c0_i32_0 : i32, i32, i32
  }
  func.func @transform_2(%arg0: i32, %arg1: i32) -> (i32, i32, i32) {
    %c0_i32 = arith.constant 0 : i32
    %c0_i32_0 = arith.constant 0 : i32
    %c0_i32_1 = arith.constant 0 : i32
    return %arg0, %c0_i32, %c0_i32_0 : i32, i32, i32
  }
  func.func @transform_3(%arg0: i32, %arg1: i32) -> (i32, i32, i32, i32) {
    %c0_i32 = arith.constant 0 : i32
    %c0_i32_0 = arith.constant 0 : i32
    %c0_i32_1 = arith.constant 0 : i32
    %c0_i32_2 = arith.constant 0 : i32
    return %arg0, %c0_i32, %c0_i32_0, %c0_i32_1 : i32, i32, i32, i32
  }
  func.func @transform_4(%arg0: i32, %arg1: i32) -> (i32, i32, i32) {
    %c0_i32 = arith.constant 0 : i32
    %c0_i32_0 = arith.constant 0 : i32
    %c0_i32_1 = arith.constant 0 : i32
    %c0_i32_2 = arith.constant 0 : i32
    return %c0_i32, %c0_i32_0, %c0_i32_1 : i32, i32, i32
  }
  func.func @transform_5(%arg0: i32, %arg1: i32) -> (i32, i32, i32) {
    %c0_i32 = arith.constant 0 : i32
    %c0_i32_0 = arith.constant 0 : i32
    %c0_i32_1 = arith.constant 0 : i32
    %c0_i32_2 = arith.constant 0 : i32
    return %c0_i32, %c0_i32_0, %c0_i32_1 : i32, i32, i32
  }
  func.func @transform_6(%arg0: i32, %arg1: i32) -> (i32, i32, i32) {
    %c0_i32 = arith.constant 0 : i32
    %c0_i32_0 = arith.constant 0 : i32
    return %arg0, %arg1, %c0_i32 : i32, i32, i32
  }
}

</mosaic_0001>

<bundles_post_ra>
// kernel: tpu_custom_call.1
= control target key start
LH: loop header
LB: loop body
LE: loop exit
PB: predicated region body
PF: predicated region fallthrough
CT: control target
= control target key end

     0   :  { %s2893_s0 = inlined_call_operand.hbm [shape: f32[2,8,32], index: 0, kind: input, shape index: {}]   ;;  %s2894_s1 = inlined_call_operand.hbm [shape: f32[2,8,32], index: 1, kind: input, shape index: {}]   ;;  %s2895_s2 = inlined_call_operand.hbm [shape: f32[2,8,32], index: 2, kind: input, shape index: {}]   ;;  %s2896_s3 = inlined_call_operand.vmem [shape: f32[2,1,1,8], index: 3, kind: input, shape index: {}]   ;;  %s2897_s4 = inlined_call_operand.hbm [shape: bf16[4,32,32], index: 4, kind: input, shape index: {}]   ;;  %s2898_s5 = inlined_call_operand.vmem [shape: f32[4,1,32], index: 5, kind: input, shape index: {}]   ;;  %s2899_s6 = inlined_call_operand.hbm [shape: f32[2,8,32], index: 6, kind: output, shape index: {}]  }
   0x1   :  { %2919 = sst [smem:[#allocation22_spill]] %s2894_s1 }
   0x2   :  { %2920 = sst [smem:[#allocation23_spill]] %s2896_s3 }
   0x3   :  { %2921 = sst [smem:[#allocation24_spill]] %s2899_s6 }
   0x4   :  { %11 = vsyncpa [#allocation3], 0 }
   0x5   :  { %13 = vsyncpa [#allocation3 + $0x1], 0 }
   0x6   :  { %14 = vsyncpa [#allocation6], 0 }
   0x7   :  { %16 = vsyncpa [#allocation6 + $0x1], 0 }
   0x8   :  { %17 = vsyncpa [#allocation9], 0 }
   0x9   :  { %18 = vsyncpa [#allocation4], 0 }
   0xa   :  { %20 = vsyncpa [#allocation4 + $0x1], 0  ;;  %s2405_s21 = smov 0   ;;  %s2407_s22 = smov 0  }
   0xb   :  { %s2409_s23 = smov 0   ;;  %s2411_s24 = smov 0  }
   0xc   :  { %s2413_s25 = smov 0   ;;  %s2415_s26 = smov 0  }
   0xd LB: > { %2922 = sst [smem:[#allocation15_spill]] %s2330_s21  ;;  %s38_s27 = sadd.s32 1, %s2346_s25  ;;  %s2350_s26 = sphi %s2415_s26, %s26_s26   ;;  %s2346_s25 = sphi %s2413_s25, %s2958_s25   ;;  %s2342_s24 = sphi %s2411_s24, %s2957_s24   ;;  %s2338_s23 = sphi %s2409_s23, %s2961_s23   ;;  %s2334_s22 = sphi %s2407_s22, %s2960_s22   ;;  %s2330_s21 = sphi %s2405_s21, %s2959_s21  }
   0xe   : > { %2923 = sst [smem:[#allocation16_spill]] %s2346_s25  ;;  %s47_s28 = sadd.s32 1, %s2338_s23 }
   0xf   : > { %2924 = sst [smem:[#allocation17_spill]] %s2350_s26  ;;  %p40_p0 = scmp.ge.s32.totalorder %s38_s27, 2 }
  0x10   : > { %p2900_p1 = scmp.ne.s32.totalorder %s2338_s23, %s2334_s22  ;;  %p55_p2 = scmp.eq.s32.totalorder %s2350_s26, 0 }
  0x11   : > { %s2963_s27 = smov (%p40_p0, %s38_s27), 0  ;;  %p2053_p5 = scmp.lt.s32.totalorder %s2350_s26, 2 }
  0x12   : > { %2925 = sst [smem:[#allocation18_spill]] %s2963_s27  ;;  %p56_p4 = por %p55_p2, %p2900_p1 }
  0x13   : > { %s42_s29 = ssub.s32 %s2346_s25, %s2963_s27  ;;  %s2901_s30 = sand.u32 1, %s2338_s23  }
  0x14   : > { %p45_p6 = scmp.eq.s32.totalorder %s42_s29, 0  ;;  %s2452_s7 = sshll.u32 %s2901_s30, 3 }
  0x15   : > { %s2455_s8 = sshll.u32 %s2346_s25, 7  ;;  %p2457_p7 = pnand %p2053_p5, %p56_p4 }
  0x16   : > { %s2462_s10 = scalar_select %p45_p6, %s2338_s23, %s47_s28  }
  0x17   : > { %s2926_s9 = scalar_select %p2457_p7, 1, 0 }
  0x18   : > { %2927 = sst [smem:[#allocation19_spill]] %s2462_s10  ;;  %s267_s11 = sand.u32 1, %s2350_s26  }
  0x19   : > { %s2928_s1 = sld [smem:[#allocation22_spill]]  ;;  %s271_s15 = scalar_lea.vmem [#allocation5], %s2452_s7 }
  0x1a   : > { %s278_s16 = sshll.u32 %s271_s15, 4  ;;  %s2474_s17 = scalar_lea.sflag [#allocation6], %s267_s11  ;;  %s2472_s16 = int_to_ptr.vmem [resolvable:$true] %s278_s16 }
  0x1b   : > { %p2480_p9 = pneg %p2457_p7 }
  0x1d   : > { %s2929_s19 = scalar_select %p2480_p9, 1, 0 }
  0x1f   : > { %s2469_s14 = scalar_lea.hbm %s2928_s1, %s2455_s8  ;;  %s2147_s29 = scalar_lea.hbm %s2928_s1, 256 }
  0x20   : > { %s2142_s18 = scalar_lea.hbm %s2469_s14, 128  ;;  %p2148_p12 = scmp.lt.u32.totalorder %s2469_s14, %s2928_s1 }
  0x21   : > { %p2143_p8 = scmp.ne.s32.totalorder %s2469_s14, %s2142_s18  ;;  %p2149_p13 = scmp.lt.u32.totalorder %s2147_s29, %s2142_s18 }
  0x22   : > { %p2151_p2 = scmp.lt.u32.totalorder %s2142_s18, %s2469_s14 }
  0x23   : > { %p2145_p10 = pnand %p2480_p9, %p2143_p8  ;;  %p2150_p0 = por %p2149_p13, %p2148_p12 }
  0x25   : > { %p2146_p11 = pneg %p2145_p10  ;;  %p2152_p4 = por %p2151_p2, %p2150_p0 }
  0x27   : > { %p2153_p5 = pnand %p2152_p4, %p2146_p11 }
  0x29   : > { %2156 = shalt.err (!%p2153_p5)
}
  0x2a   : > { %s2157_s11 = scalar_lea.vmem %s2472_s16, 128  ;;  %s2352_s15 = smov [#allocation5]  }
  0x2b   : > { %p2158_p6 = scmp.ne.s32.totalorder %s2472_s16, %s2157_s11  ;;  %s2162_s20 = sshll.u32 %s2352_s15, 4  ;;  %s2163_s20 = int_to_ptr.vmem [resolvable:$false] %s2162_s20 }
  0x2c   : > { %s2164_s28 = scalar_lea.vmem %s2163_s20, 256  ;;  %p2165_p3 = scmp.lt.s32.totalorder %s2472_s16, %s2163_s20 }
  0x2d   : > { %p2160_p8 = pnand %p2158_p6, %p2480_p9  ;;  %p2166_p1 = scmp.lt.s32.totalorder %s2164_s28, %s2157_s11 }
  0x2f   : > { %p2161_p10 = pneg %p2160_p8  ;;  %p2167_p12 = por %p2166_p1, %p2165_p3 }
  0x31   : > { %p2168_p13 = pnand %p2167_p12, %p2161_p10 }
  0x33   : > { %2171 = shalt.err (!%p2168_p13)
}
  0x34   : > { %2044 = dma.hbm_to_vmem [thread:$0]  (!%p2457_p7), %s2469_s14, 128, %s2472_s16, %s2474_s17  }
  0x35   : > { %s2505_s18 = sadd.s32 4294967295, %s2350_s26   ;;  %s1859_s29 = sadd.s32 4294967294, %s2350_s26  }
  0x36   : > { %p60_p1 = scmp.ne.s32.totalorder %s2334_s22, %s2330_s21  ;;  %p2907_p3 = scmp.eq.s32.totalorder %s2505_s18, 0 }
  0x37   : > { %p206_p11 = scmp.eq.s32.totalorder %s2505_s18, 1  ;;  %p212_p0 = scmp.eq.s32.totalorder %s1859_s29, 1 }
  0x38   : > { %p1860_p2 = scmp.ge.s32.totalorder %s2350_s26, 1  ;;  %p2515_p4 = por %p2907_p3, %p60_p1 }
  0x39   : > { %p2931_p5 = scmp.ne.s32.totalorder %s2338_s23, %s2334_s22  ;;  %p2526_p8 = por %p212_p0, %p60_p1 }
  0x3a   : > { %s2930_s12 = scalar_select %p2515_p4, 1, 0 }
  0x3b   : > { %p2522_p6 = por %p206_p11, %p2931_p5  ;;  %p219_p10 = scmp.lt.s32.totalorder %s2350_s26, 3 }
  0x3c   : > { %s2934_s16 = scalar_select %p2526_p8, 1, 0 }
  0x3d   : > { %s2932_s14 = scalar_select %p2522_p6, 1, 0 }
  0x3e   : > { %2935 = sst [smem:[#allocation21_spill]] %s2934_s16  ;;  %p2531_p12 = pnand %p1860_p2, %p219_p10 }
  0x3f   : > { %2933 = sst [smem:[#allocation20_spill]] %s2932_s14  ;;  %s2353_s11 = smov [#allocation8]  }
  0x40   : > { %s2936_s13 = scalar_select %p2531_p12, 1, 0 }
  0x41   : > { %s231_s15 = sshll.u32 %s2353_s11, 4  ;;  %p2034_p13 = pneg %p2531_p12  ;;  %s2535_s15 = int_to_ptr.vmem [resolvable:$true] %s231_s15 }
  0x42   : > { %s2549_s30 = scalar_lea.hbm %s2893_s0, %s2455_s8  ;;  %s252_s1 = scalar_lea.vmem [#allocation2], %s2452_s7 }
  0x43   : > { %p2541_p11 = pnand %p2034_p13, %p2907_p3  ;;  %s260_s27 = sshll.u32 %s252_s1, 4  ;;  %s2552_s27 = int_to_ptr.vmem [resolvable:$true] %s260_s27 }
  0x44   : > { %s2172_s10 = scalar_lea.hbm %s2897_s4, 1024 }
  0x45   : > { %p2173_p1 = scmp.ne.s32.totalorder %s2897_s4, %s2172_s10  ;;  %p2174_p0 = pneg %p2541_p11 }
  0x46   : > { %p2179_p10 = scmp.lt.u32.totalorder %s2172_s10, %s2897_s4 }
  0x47   : > { %p2175_p2 = pnand %p2174_p0, %p2173_p1 }
  0x49   : > { %p2176_p5 = pneg %p2175_p2 }
  0x4b   : > { %p2181_p13 = pnand %p2179_p10, %p2176_p5 }
  0x4d   : > { %2184 = shalt.err (!%p2181_p13)
}
  0x4e   : > { %s2185_s1 = scalar_lea.vmem %s2535_s15, 1024  ;;  %p2193_p4 = scmp.lt.s32.totalorder %s2535_s15, %s2535_s15 }
  0x4f   : > { %p2186_p3 = scmp.ne.s32.totalorder %s2535_s15, %s2185_s1  ;;  %p2194_p12 = scmp.lt.s32.totalorder %s2185_s1, %s2185_s1 }
  0x51   : > { %p2188_p8 = pnand %p2186_p3, %p2174_p0  ;;  %p2195_p7 = por %p2194_p12, %p2193_p4 }
  0x53   : > { %p2189_p6 = pneg %p2188_p8 }
  0x55   : > { %p2196_p9 = pnand %p2195_p7, %p2189_p6 }
  0x57   : > { %2199 = shalt.err (!%p2196_p9)
}
  0x58   : > { %s2354_s25 = smov 64   ;;  %s2355_s26 = smov 4  }
  0x59   : > { %2037 = dma.hbm_to_vmem [thread:$0]  (!%p2541_p11), %s2897_s4, 1024, %s2535_s15, [#allocation9], %s2354_s25, %s2354_s25, %s2355_s26  }
  0x5a   : > { %s2938_s11 = sand.u32 1, %s2338_s23   ;;  %s2200_s29 = scalar_lea.hbm %s2549_s30, 128 }
  0x5b   : > { %s249_s28 = scalar_lea.sflag [#allocation3], %s2938_s11  ;;  %p2201_p7 = scmp.ne.s32.totalorder %s2549_s30, %s2200_s29 }
  0x5c   : > { %p2939_p9 = scmp.ne.s32.totalorder %s2929_s19, 0  ;;  %s2205_s6 = scalar_lea.hbm %s2893_s0, 256 }
  0x5d   : > { %p2206_p6 = scmp.lt.u32.totalorder %s2549_s30, %s2893_s0  ;;  %p2207_p8 = scmp.lt.u32.totalorder %s2205_s6, %s2200_s29 }
  0x5e   : > { %p2203_p3 = pnand %p2201_p7, %p2939_p9  ;;  %p2209_p1 = scmp.lt.u32.totalorder %s2200_s29, %s2549_s30 }
  0x5f   : > { %p2208_p12 = por %p2207_p8, %p2206_p6 }
  0x60   : > { %p2204_p4 = pneg %p2203_p3 }
  0x61   : > { %p2210_p0 = por %p2209_p1, %p2208_p12 }
  0x63   : > { %p2211_p11 = pnand %p2210_p0, %p2204_p4 }
  0x65   : > { %2214 = shalt.err (!%p2211_p11)
}
  0x66   : > { %s2215_s15 = scalar_lea.vmem %s2552_s27, 128  ;;  %s2356_s21 = smov [#allocation2]  }
  0x67   : > { %p2216_p2 = scmp.ne.s32.totalorder %s2552_s27, %s2215_s15  ;;  %s2220_s20 = sshll.u32 %s2356_s21, 4  ;;  %s2221_s20 = int_to_ptr.vmem [resolvable:$false] %s2220_s20 }
  0x68   : > { %s2222_s3 = scalar_lea.vmem %s2221_s20, 256  ;;  %p2223_p13 = scmp.lt.s32.totalorder %s2552_s27, %s2221_s20 }
  0x69   : > { %p2218_p5 = pnand %p2216_p2, %p2939_p9  ;;  %p2224_p7 = scmp.lt.s32.totalorder %s2222_s3, %s2215_s15 }
  0x6b   : > { %p2219_p10 = pneg %p2218_p5  ;;  %p2225_p3 = por %p2224_p7, %p2223_p13 }
  0x6d   : > { %p2226_p6 = pnand %p2225_p3, %p2219_p10 }
  0x6f   : > { %2229 = shalt.err (!%p2226_p6)
}
  0x70   : > { %p2940_p4 = scmp.ne.s32.totalorder %s2926_s9, 0  ;;  %s2602_s25 = scalar_lea.hbm %s2895_s2, %s2455_s8 }
  0x71   : > { %s289_s26 = scalar_lea.vmem [#allocation7], %s2452_s7  ;;  %s2230_s16 = scalar_lea.hbm %s2602_s25, 128 }
  0x72   : > { %2041 = dma.hbm_to_vmem [thread:$0]  (!%p2940_p4), %s2549_s30, 128, %s2552_s27, %s249_s28  }
  0x73   : > { %s296_s10 = sshll.u32 %s289_s26, 4  ;;  %p2231_p8 = scmp.ne.s32.totalorder %s2602_s25, %s2230_s16  ;;  %s297_s10 = int_to_ptr.vmem [resolvable:$true] %s296_s10 }
  0x74   : > { %s2235_s27 = scalar_lea.hbm %s2895_s2, 256  ;;  %p2236_p0 = scmp.lt.u32.totalorder %s2602_s25, %s2895_s2 }
  0x75   : > { %p2233_p12 = pnand %p2231_p8, %p2939_p9  ;;  %p2237_p11 = scmp.lt.u32.totalorder %s2235_s27, %s2230_s16 }
  0x76   : > { %p2239_p5 = scmp.lt.u32.totalorder %s2230_s16, %s2602_s25 }
  0x77   : > { %p2234_p1 = pneg %p2233_p12  ;;  %p2238_p2 = por %p2237_p11, %p2236_p0 }
  0x79   : > { %p2240_p10 = por %p2239_p5, %p2238_p2 }
  0x7b   : > { %p2241_p13 = pnand %p2240_p10, %p2234_p1 }
  0x7d   : > { %2244 = shalt.err (!%p2241_p13)
}
  0x7e   : > { %s2245_s7 = scalar_lea.vmem %s297_s10, 128  ;;  %s2357_s8 = smov [#allocation7]  }
  0x7f   : > { %p2246_p7 = scmp.ne.s32.totalorder %s297_s10, %s2245_s7  ;;  %s2250_s1 = sshll.u32 %s2357_s8, 4  ;;  %s2251_s1 = int_to_ptr.vmem [resolvable:$false] %s2250_s1 }
  0x80   : > { %s2252_s15 = scalar_lea.vmem %s2251_s1, 256  ;;  %p2253_p8 = scmp.lt.s32.totalorder %s297_s10, %s2251_s1 }
  0x81   : > { %p2248_p3 = pnand %p2246_p7, %p2939_p9  ;;  %p2254_p12 = scmp.lt.s32.totalorder %s2252_s15, %s2245_s7 }
  0x83   : > { %p2249_p6 = pneg %p2248_p3  ;;  %p2255_p4 = por %p2254_p12, %p2253_p8 }
  0x85   : > { %p2256_p0 = pnand %p2255_p4, %p2249_p6 }
  0x87   : > { %2259 = shalt.err (!%p2256_p0)
}
  0x88   : > { %p2941_p11 = scmp.ne.s32.totalorder %s2926_s9, 0  ;;  %p2942_p1 = scmp.ne.s32.totalorder %s2936_s13, 0 }
  0x89   : > { %s2626_s19 = sand.u32 (!%p2942_p1), 1, %s2334_s22   ;;  %p2943_p9 = scmp.ne.s32.totalorder (!%p2942_p1), %s2930_s12, 0 }
  0x8a   : > { %2047 = dma.hbm_to_vmem [thread:$0]  (!%p2941_p11), %s2602_s25, 128, %s297_s10, %s2474_s17  }
  0x8b   : > { %311 = sbr.rel (%p2942_p1) target bundleno = 1689 (0x699), region = 44  ;;  %s2629_s21 = sshll.u32 (!%p2942_p1), %s2626_s19, 3 }
  0x8c   : > { %s314_s20 = scalar_lea.sflag (!%p2942_p1), [#allocation3], %s2626_s19  ;;  %s317_s3 = scalar_lea.vmem (!%p2942_p1), [#allocation2], %s2629_s21 }
  0x92   : > { %2313 = dma.done.wait (%p2943_p9), %s314_s20, 128  }
  0x93   : > { %2315 = vsyncadd (%p2943_p9), %s314_s20, 4294967168  ;;  %s322_s9 = sand.u32 1, %s2505_s18   ;;  %s326_s13 = scalar_lea.vmem [#allocation5], %s2629_s21 }
  0x94   : > { %s323_s17 = scalar_lea.sflag [#allocation6], %s322_s9 }
  0x95   : > { %2317 = dma.done.wait (%p2943_p9), %s323_s17, 256  }
  0x96   : > { %2319 = vsyncadd (%p2943_p9), %s323_s17, 4294967040  ;;  %s335_s6 = scalar_lea.vmem [#allocation7], %s2629_s21  ;;  %p2944_p4 = scmp.eq.s32.totalorder %s2505_s18, 0 }
  0x98   : > { %2321 = dma.done.wait (%p2944_p4), [#allocation9], 1024   ;;  %p2945_p2 = pmov %p2944_p4 }
  0x99   : > { %v2358_v0 = vmov 0.0   ;;  %vm2359_vm0 = vmmov 0   ;;  %v2118_v1 = vld [vmem:[#allocation8 + $0x10] sm:$0xff]   ;;  %v2119_v2 = vld [vmem:[#allocation8] sm:$0xff]   ;;  %v2120_v3 = vld [vmem:[#allocation8 + $0x18] sm:$0xff]   ;;  %vm435_vm1 = vcmask 261120   ;;  %v616_v27 = vlaneseq }
  0x9a   : > { %2323 = vsyncadd (%p2945_p2), [#allocation9], 4294966272  ;;  %1950 = vmatprep.subr.bf16.mxu1 %v2358_v0  ;;  %1942 = vmatprep.subr.bf16.mxu0 %v2358_v0  ;;  %v387_v4 = vld [vmem:[%s326_s13] sm:$0xff]  ;;  %v385_v6 = vld [vmem:[%s317_s3] sm:$0xff]  ;;  %s2360_s26 = smov 104   ;;  %s2361_s10 = smov 120  }
  0x9b   : > { %1954 = vmatprep.mubr.msk.bf16.mxu1 %vm2359_vm0, %v2358_v0  ;;  %1946 = vmatprep.mubr.msk.bf16.mxu0 %vm2359_vm0, %v2358_v0  ;;  %v2121_v5 = vld [vmem:[#allocation8 + $0x8] sm:$0xff]   ;;  %v388_v7 = vpack.c.bf16 %v387_v4, %v387_v4  ;;  %v386_v8 = vpack.c.bf16 %v385_v6, %v385_v6  ;;  %v1882_v9 = vld [vmem:[%s2898_s5 + $0x1] ss:$0 sm:$0xff]  ;;  %v1878_v11 = vld [vmem:[%s2898_s5] ss:$0 sm:$0xff]  ;;  %s2362_s16 = smov 112  }
  0x9c   : > { %1951 = vmatpush3.bf16.msra.mxu1 %v2118_v1  ;;  %1943 = vmatpush3.bf16.msra.mxu0 %v2119_v2  ;;  %v2122_v15 = vld [vmem:[#allocation8 + $0x20] sm:$0xff]   ;;  %v2123_v22 = vld [vmem:[#allocation8 + $0x28] sm:$0xff]   ;;  %v389_v23 = vld [vmem:[%s335_s6] sm:$0xff]  ;;  %v2363_v25 = vmov 1983009808   ;;  %v2683_v31 = vshrl.u32 %v616_v27, 7 }
  0x9d   : > { %1952 = vmatprep.subr.bf16.mxu1 %v2358_v0  ;;  %1944 = vmatprep.subr.bf16.mxu0 %v2358_v0  ;;  %v390_v24 = vpack.c.bf16 %v389_v23, %v389_v23  ;;  %v614_v26 = vunpack.c.l.s4 %v2363_v25  ;;  %v2364_v28 = vmov 1934713408   ;;  %vm1051_vm2 = vcmask 64512   ;;  %p381_p5 = scmp.lt.s32.totalorder %s2342_s24, 1  ;;  %s2946_s30 = sld [smem:[#allocation23_spill]] }
  0x9e   : > { %v646_v29 = vunpack.c.l.s4 %v2364_v28  ;;  %vm1303_vm5 = vcmask 1043456   ;;  %s2366_s1 = smov 16   ;;  %s2367_s15 = smov 8   ;;  %vm1634_vm6 = vcmask 130048   ;;  %vm1636_vm7 = vcmask 195584  }
  0x9f   : > { %v615_v30 = vunpack.c.0.s8 %v614_v26  ;;  %s382_s11 = scalar_select %p381_p5, %s2342_s24, 1 }
  0xa0   : > { %1953 = vmatpush3.bf16.msra.mxu1 %v2120_v3  ;;  %1945 = vmatpush3.bf16.msra.mxu0 %v2121_v5  ;;  %v647_v34 = vunpack.c.0.s8 %v646_v29  ;;  %s2368_s20 = smov 24   ;;  %s2947_s17 = sld [smem:[#allocation20_spill]] }
  0xa1   : > { %1966 = vmatprep.subr.bf16.mxu1 %v2358_v0  ;;  %1958 = vmatprep.subr.bf16.mxu0 %v2358_v0  ;;  %v2686_v35 = vsub.s32 %v615_v30, %v2683_v31  ;;  %s1911_s13 = sshll.u32 %s2342_s24, 7  ;;  %s380_s6 = scalar_lea.vmem [#allocation10], %s2629_s21 }
  0xa2   : > { %v2689_v42 = vsub.s32 %v647_v34, %v2683_v31  ;;  %s1716_s18 = sshll.u32 %s380_s6, 4  ;;  %s2948_s25 = sld [smem:[#allocation24_spill]]  ;;  %s2845_s18 = int_to_ptr.vmem [resolvable:$true] %s1716_s18 }
  0xa3   : > { %1955 = vmatmul.mubr.msk.bf16.vlgmr.msra.gmra.mrb[0].mxu1 %vm435_vm1, %v388_v7  ;;  %1947 = vmatmul.mubr.msk.bf16.vlgmr.msra.gmra.mrb[0].mxu0 %vm435_vm1, %v386_v8  ;;  %s383_s28 = scalar_lea.vmem %s2946_s30, %s382_s11  ;;  %s1702_s24 = scalar_lea.sflag [#allocation4], %s2626_s19 }
  0xa4   : > { %1968 = vmatprep.mubr.msk.bf16.mxu1 %vm2359_vm0, %v2358_v0  ;;  %1962 = vmatprep.mubr.msk.bf16.mxu0 %vm2359_vm0, %v2358_v0  ;;  %s2260_s21 = scalar_lea.vmem %s2845_s18, 128 }
  0xa5   : > { %1959 = vmatpush3.bf16.msra.mxu0 %v2122_v15  ;;  %p2261_p10 = scmp.ne.s32.totalorder %s2845_s18, %s2260_s21 }
  0xa6   : > { %1960 = vmatprep.subr.bf16.mxu0 %v2358_v0  ;;  %p2950_p13 = scmp.ne.s32.totalorder %s2947_s17, 0 }
  0xa8   : > { %p2262_p7 = pnand %p2261_p10, %p2950_p13 }
  0xa9   : > { %1961 = vmatpush3.bf16.msra.mxu0 %v2123_v22 }
  0xaa   : > { %1972 = vmatprep.subr.bf16.mxu0 %v2358_v0  ;;  %p2263_p3 = pneg %p2262_p7 }
  0xac   : > { %1963 = vmatmul.mubr.msk.bf16.vlgmr.msra.gmra.mrb[4].mxu0 %vm435_vm1, %v390_v24 }
  0xad   : > { %1974 = vmatprep.mubr.msk.bf16.mxu0 %vm2359_vm0, %v2358_v0 }
 0x176   : > { %v534_v10 = vpop.f32.mrb[0].mxu1  ;;  %v473_v14 = vpop.f32.mrb[0].mxu0 }
 0x177   : > { %v535_v12 = vadd.f32 %v1882_v9, %v534_v10  ;;  %v1956_v13 = vpop.f32.mrb[1].mxu1  ;;  %v1948_v17 = vpop.f32.mrb[1].mxu0  ;;  %v474_v19 = vadd.f32 %v1878_v11, %v473_v14 }
 0x178   : > { %v537_v16 = vpop.f32.mrb[2].mxu1  ;;  %v476_v20 = vpop.f32.mrb[2].mxu0 }
 0x179   : > { %758 = vrot.lane.b32.xlu1 %v535_v12, %s2360_s26  ;;  %752 = vrot.lane.b32.xlu0 %v535_v12, %s2361_s10  ;;  %v1957_v18 = vpop.f32.mrb[3].mxu1  ;;  %v1949_v21 = vpop.f32.mrb[3].mxu0 }
 0x17d   : > { %755 = vrot.lane.b32.xlu0 %v535_v12, %s2362_s16  ;;  %602 = vrot.lane.b32.xlu1 %v474_v19, %s2361_s10 }
 0x181   : > { %605 = vrot.lane.b32.xlu0 %v474_v19, %s2362_s16  ;;  %608 = vrot.lane.b32.xlu1 %v474_v19, %s2360_s26 }
 0x1eb   : > { %v759_v32 = vpop.permute.xlu1 %758  ;;  %v753_v33 = vpop.permute.xlu0 %752 }
 0x1ec   : > { %v777_v36 = vcombine.low %v753_v33, %v759_v32  ;;  %v778_v37 = vcombine.high %v753_v33, %v759_v32 }
 0x1ee   : > { %v785_v43 = vrot.slane %v777_v36, %v2686_v35  ;;  %v792_v44 = vrot.slane %v778_v37, %v2686_v35 }
 0x1ef   : > { %v756_v38 = vpop.permute.xlu0 %755  ;;  %v603_v39 = vpop.permute.xlu1 %602 }
 0x1f0   : > { %v761_v40 = vcombine.low %v535_v12, %v756_v38  ;;  %v762_v41 = vcombine.high %v535_v12, %v756_v38 }
 0x1f2   : > { %v769_v45 = vrot.slane %v761_v40, %v2686_v35  ;;  %v776_v46 = vrot.slane %v762_v41, %v2686_v35 }
 0x1f3   : > { %v606_v47 = vpop.permute.xlu0 %605  ;;  %v609_v48 = vpop.permute.xlu1 %608 }
 0x1f4   : > { %v793_v49 = vcombine.low %v769_v45, %v785_v43  ;;  %v794_v50 = vcombine.high %v769_v45, %v785_v43  ;;  %v809_v51 = vcombine.low %v776_v46, %v792_v44  ;;  %v810_v52 = vcombine.high %v776_v46, %v792_v44 }
 0x1f5   : > { %v611_v53 = vcombine.low %v474_v19, %v606_v47  ;;  %v612_v54 = vcombine.high %v474_v19, %v606_v47  ;;  %v627_v55 = vcombine.low %v603_v39, %v609_v48  ;;  %v628_v56 = vcombine.high %v603_v39, %v609_v48 }
 0x1f6   : > { %v801_v57 = vrot.slane %v793_v49, %v2689_v42  ;;  %v808_v58 = vrot.slane %v794_v50, %v2689_v42  ;;  %v817_v59 = vrot.slane %v809_v51, %v2689_v42  ;;  %v824_v60 = vrot.slane %v810_v52, %v2689_v42 }
 0x1f7   : > { %v619_v61 = vrot.slane %v611_v53, %v2686_v35  ;;  %v626_v62 = vrot.slane %v612_v54, %v2686_v35  ;;  %v635_v63 = vrot.slane %v627_v55, %v2686_v35  ;;  %v642_v1 = vrot.slane %v628_v56, %v2686_v35 }
 0x1f8   : > { %v829_v2 = vcombine.low %v801_v57, %v808_v58  ;;  %v1892_v3 = vcombine.high %v801_v57, %v808_v58  ;;  %v845_v4 = vcombine.low %v817_v59, %v824_v60  ;;  %v1893_v5 = vcombine.high %v817_v59, %v824_v60 }
 0x1f9   : > { %v643_v6 = vcombine.low %v619_v61, %v635_v63  ;;  %v644_v7 = vcombine.high %v619_v61, %v635_v63  ;;  %v659_v8 = vcombine.low %v626_v62, %v642_v1  ;;  %v660_v9 = vcombine.high %v626_v62, %v642_v1 }
 0x1fa   : > { %v836_v10 = vrot.slane %v829_v2, %v2686_v35  ;;  %v844_v11 = vrot.slane %v1892_v3, %v2686_v35  ;;  %v852_v12 = vrot.slane %v845_v4, %v2686_v35  ;;  %v860_v13 = vrot.slane %v1893_v5, %v2686_v35  ;;  %v595_v2 = vpop.f32.mrb[4].mxu0 }
 0x1fb   : > { %v651_v14 = vrot.slane %v643_v6, %v2689_v42  ;;  %v658_v15 = vrot.slane %v644_v7, %v2689_v42  ;;  %v667_v16 = vrot.slane %v659_v8, %v2689_v42  ;;  %v674_v17 = vrot.slane %v660_v9, %v2689_v42  ;;  %v1964_v3 = vpop.f32.mrb[5].mxu0  ;;  %v1240_v6 = vld [vmem:[%s383_s28] sm:$0x1] }
 0x1fc   : > { %v861_v18 = vcombine.low %v836_v10, %v844_v11  ;;  %v877_v19 = vcombine.low %v852_v12, %v860_v13  ;;  %v862_v20 = vcombine.high %v836_v10, %v844_v11  ;;  %v878_v21 = vcombine.high %v852_v12, %v860_v13  ;;  %v598_v4 = vpop.f32.mrb[6].mxu0 }
 0x1fd   : > { %v679_v22 = vcombine.low %v651_v14, %v658_v15  ;;  %v1890_v23 = vcombine.high %v651_v14, %v658_v15  ;;  %v695_v24 = vcombine.low %v667_v16, %v674_v17  ;;  %v1891_v25 = vcombine.high %v667_v16, %v674_v17  ;;  %v1965_v5 = vpop.f32.mrb[7].mxu0 }
 0x1fe   : > { %v869_v26 = vrot.slane %v861_v18, %v2689_v42  ;;  %v885_v27 = vrot.slane %v877_v19, %v2689_v42  ;;  %v876_v36 = vrot.slane %v862_v20, %v2689_v42  ;;  %v892_v37 = vrot.slane %v878_v21, %v2689_v42 }
 0x1ff   : > { %v686_v28 = vrot.slane %v679_v22, %v2686_v35  ;;  %v694_v29 = vrot.slane %v1890_v23, %v2686_v35  ;;  %v702_v30 = vrot.slane %v695_v24, %v2686_v35  ;;  %v710_v32 = vrot.slane %v1891_v25, %v2686_v35 }
 0x200   : > { %v893_v33 = vcombine.low %v869_v26, %v885_v27  ;;  %v894_v34 = vcombine.high %v869_v26, %v885_v27  ;;  %v895_v47 = vcombine.low %v876_v36, %v892_v37  ;;  %v896_v48 = vcombine.high %v876_v36, %v892_v37 }
 0x201   : > { %v711_v38 = vcombine.low %v686_v28, %v694_v29  ;;  %v727_v39 = vcombine.low %v702_v30, %v710_v32  ;;  %v712_v49 = vcombine.high %v686_v28, %v694_v29  ;;  %v728_v50 = vcombine.high %v702_v30, %v710_v32 }
 0x202   : > { %v897_v40 = vpack.c.bf16 %v893_v33, %v893_v33  ;;  %v898_v41 = vpack.c.bf16 %v894_v34, %v894_v34  ;;  %v899_v53 = vpack.c.bf16 %v895_v47, %v895_v47  ;;  %v900_v54 = vpack.c.bf16 %v896_v48, %v896_v48 }
 0x203   : > { %v719_v43 = vrot.slane %v711_v38, %v2689_v42  ;;  %v735_v44 = vrot.slane %v727_v39, %v2689_v42  ;;  %v726_v57 = vrot.slane %v712_v49, %v2689_v42  ;;  %v742_v58 = vrot.slane %v728_v50, %v2689_v42 }
 0x204   : > { %v1056_v45 = vsel %vm1051_vm2, %v897_v40, 0  ;;  %v1102_v46 = vsel %vm1051_vm2, %v898_v41, 0  ;;  %v1148_v59 = vsel %vm1051_vm2, %v899_v53, 0  ;;  %v1194_v60 = vsel %vm1051_vm2, %v900_v54, 0  ;;  %v1886_v40 = vld [vmem:[%s2898_s5 + $0x2] ss:$0 sm:$0xff] }
 0x205   : > { %1967 = vmatpush3.bf16.xpose.msra.mxu1 %v1056_v45  ;;  %1973 = vmatpush3.bf16.xpose.msra.mxu0 %v1102_v46  ;;  %v743_v51 = vcombine.low %v719_v43, %v735_v44  ;;  %v744_v52 = vcombine.high %v719_v43, %v735_v44  ;;  %v745_v61 = vcombine.low %v726_v57, %v742_v58  ;;  %vm1241_vm3 = vcmp.eq.f32.partialorder %v1240_v6, 0.0 }
 0x206   : > { %1978 = vmatprep.subr.bf16.mxu1 %v2358_v0  ;;  %1984 = vmatprep.subr.bf16.mxu0 %v2358_v0  ;;  %v746_v62 = vcombine.high %v726_v57, %v742_v58  ;;  %v1245_v7 = vsub.s32 0, %v2683_v31  ;;  %v2365_v8 = vmov 0   ;;  %v596_v41 = vadd.f32 %v1886_v40, %v595_v2 }
 0x207   : > { %v747_v55 = vpack.c.bf16 %v743_v51, %v743_v51  ;;  %v748_v56 = vpack.c.bf16 %v744_v52, %v744_v52  ;;  %v749_v63 = vpack.c.bf16 %v745_v61, %v745_v61  ;;  %v1242_v9 = vsel %vm1241_vm3, 1, %v2365_v8 }
 0x208   : > { %v750_v1 = vpack.c.bf16 %v746_v62, %v746_v62  ;;  %v1246_v10 = vrot.slane %v1242_v9, %v1245_v7 }
 0x20a   : > { %vm1247_vm4 = vcmp.eq.s32.totalorder %v1246_v10, 1 }
 0x20c   : > { %1969 = vmatmul.mubr.msk.bf16.vlgmr.msra.gmra.mrb[4].mxu1 %vm1051_vm2, %v747_v55  ;;  %1975 = vmatmul.mubr.msk.bf16.vlgmr.msra.gmra.mrb[8].mxu0 %vm1051_vm2, %v748_v56 }
 0x20d   : > { %1979 = vmatpush3.bf16.xpose.msra.mxu1 %v1148_v59  ;;  %1985 = vmatpush3.bf16.xpose.msra.mxu0 %v1194_v60 }
 0x20e   : > { %1980 = vmatprep.mubr.msk.bf16.mxu1 %vm2359_vm0, %v2358_v0  ;;  %1986 = vmatprep.mubr.msk.bf16.mxu0 %vm2359_vm0, %v2358_v0 }
 0x20f   : > { %1990 = vmatprep.subr.bf16.mxu1 %v2358_v0  ;;  %1996 = vmatprep.subr.bf16.mxu0 %v2358_v0 }
 0x214   : > { %1981 = vmatmul.mubr.msk.bf16.vlgmr.msra.gmra.mrb[8].mxu1 %vm1051_vm2, %v749_v63  ;;  %1987 = vmatmul.mubr.msk.bf16.vlgmr.msra.gmra.mrb[12].mxu0 %vm1051_vm2, %v750_v1 }
 0x215   : > { %1992 = vmatprep.mubr.msk.bf16.mxu1 %vm2359_vm0, %v2358_v0  ;;  %1998 = vmatprep.mubr.msk.bf16.mxu0 %vm2359_vm0, %v2358_v0 }
 0x2df   : > { %v1092_v11 = vpop.f32.mrb[4].mxu1  ;;  %v1138_v12 = vpop.f32.mrb[8].mxu0 }
 0x2e0   : > { %v1236_v13 = vmul.f32 0.17677669, %v1092_v11  ;;  %v1237_v14 = vmul.f32 0.17677669, %v1138_v12  ;;  %v1970_v15 = vpop.f32.mrb[5].mxu1  ;;  %v1976_v16 = vpop.f32.mrb[9].mxu0 }
 0x2e1   : > { %v1095_v17 = vpop.f32.mrb[6].mxu1  ;;  %v1141_v18 = vpop.f32.mrb[10].mxu0 }
 0x2e2   : > { %v1971_v19 = vpop.f32.mrb[7].mxu1  ;;  %v1977_v20 = vpop.f32.mrb[11].mxu0  ;;  %v1248_v21 = vsel %vm1247_vm4, -1e+10, %v1236_v13  ;;  %v1249_v22 = vsel %vm1247_vm4, -1e+10, %v1237_v14 }
 0x2e3   : > { %v1252_v31 = vsel %vm1051_vm2, %v1248_v21, -inf  ;;  %v1255_v23 = vsel %vm1051_vm2, %v1249_v22, -inf }
 0x2e4   : > { %1253 = vmax.xlane.f32.xlu0 %v1252_v31  ;;  %1256 = vmax.xlane.f32.xlu1 %v1255_v23 }
 0x2e7   : > { %v1184_v24 = vpop.f32.mrb[8].mxu1  ;;  %v1230_v25 = vpop.f32.mrb[12].mxu0 }
 0x2e8   : > { %v1238_v26 = vmul.f32 0.17677669, %v1184_v24  ;;  %v1239_v27 = vmul.f32 0.17677669, %v1230_v25  ;;  %v1982_v28 = vpop.f32.mrb[9].mxu1  ;;  %v1988_v29 = vpop.f32.mrb[13].mxu0 }
 0x2e9   : > { %v1187_v30 = vpop.f32.mrb[10].mxu1  ;;  %v1233_v32 = vpop.f32.mrb[14].mxu0 }
 0x2ea   : > { %v1983_v33 = vpop.f32.mrb[11].mxu1  ;;  %v1989_v34 = vpop.f32.mrb[15].mxu0  ;;  %v1250_v36 = vsel %vm1247_vm4, -1e+10, %v1238_v26  ;;  %v1251_v38 = vsel %vm1247_vm4, -1e+10, %v1239_v27 }
 0x2eb   : > { %v1258_v37 = vsel %vm1051_vm2, %v1250_v36, -inf  ;;  %v1261_v39 = vsel %vm1051_vm2, %v1251_v38, -inf }
 0x2ec   : > { %1259 = vmax.xlane.f32.xlu0 %v1258_v37 }
 0x2f0   : > { %1262 = vmax.xlane.f32.xlu0 %v1261_v39 }
 0x2f5   : > { %902 = vrot.lane.b32.xlu1 %v596_v41, %s2361_s10  ;;  %s2949_s10 = smov %s2948_s25 }
 0x371   : > { %v1254_v43 = vpop.xlane.xlu0 %1253  ;;  %v1257_v44 = vpop.xlane.xlu1 %1256 }
 0x372   : > { %v1264_v45 = vsub.f32 %v1248_v21, %v1254_v43  ;;  %v1265_v46 = vsub.f32 %v1249_v22, %v1257_v44 }
 0x374   : > { %v1268_v47 = vmul.f32 1.442695, %v1264_v45  ;;  %v1270_v48 = vmul.f32 1.442695, %v1265_v46 }
 0x375   : > { %v903_v63 = vpop.permute.xlu1 %902 }
 0x376   : > { %2126 = vpow2.f32 %v1268_v47 }
 0x377   : > { %2128 = vpow2.f32 %v1270_v48 }
 0x379   : > { %v1260_v53 = vpop.xlane.xlu0 %1259 }
 0x37a   : > { %v1266_v55 = vsub.f32 %v1250_v36, %v1260_v53 }
 0x37c   : > { %v1272_v57 = vmul.f32 1.442695, %v1266_v55 }
 0x37d   : > { %v1263_v54 = vpop.xlane.xlu0 %1262 }
 0x37e   : > { %v1267_v56 = vsub.f32 %v1251_v38, %v1263_v54  ;;  %2130 = vpow2.f32 %v1272_v57 }
 0x380   : > { %v2761_v49 = vpop.eup %2126  ;;  %v1274_v58 = vmul.f32 1.442695, %v1267_v56 }
 0x381   : > { %v2763_v50 = vpop.eup %2128  ;;  %v1276_v51 = vsel %vm1051_vm2, %v2761_v49, 0.0 }
 0x382   : > { %1277 = vadd.xlane.f32.xlu1 %v1276_v51  ;;  %v1279_v52 = vsel %vm1051_vm2, %v2763_v50, 0.0  ;;  %2132 = vpow2.f32 %v1274_v58 }
 0x383   : > { %1280 = vadd.xlane.f32.xlu0 %v1279_v52 }
 0x388   : > { %v2771_v59 = vpop.eup %2130 }
 0x389   : > { %v1282_v61 = vsel %vm1051_vm2, %v2771_v59, 0.0 }
 0x38c   : > { %v2773_v60 = vpop.eup %2132 }
 0x38d   : > { %v1285_v62 = vsel %vm1051_vm2, %v2773_v60, 0.0 }
 0x393   : > { %908 = vrot.lane.b32.xlu1 %v596_v41, %s2360_s26  ;;  %s2843_s26 = scalar_lea.hbm %s2948_s25, %s1911_s13 }
 0x399   : > { %905 = vrot.lane.b32.xlu0 %v596_v41, %s2362_s16  ;;  %s2369_s16 = smov [#allocation10]  }
 0x39a   : > { %s2264_s11 = sshll.u32 %s2369_s16, 4  ;;  %s2265_s11 = int_to_ptr.vmem [resolvable:$false] %s2264_s11 }
 0x39b   : > { %s2266_s29 = scalar_lea.vmem %s2265_s11, 256  ;;  %p2267_p6 = scmp.lt.s32.totalorder %s2845_s18, %s2265_s11 }
 0x39c   : > { %p2268_p8 = scmp.lt.s32.totalorder %s2266_s29, %s2260_s21 }
 0x39e   : > { %p2269_p12 = por %p2268_p8, %p2267_p6 }
 0x3a0   : > { %p2270_p0 = pnand %p2269_p12, %p2263_p3 }
 0x3b7   : > { %1283 = vadd.xlane.f32.xlu1 %v1282_v61 }
 0x3b8   : > { %1286 = vadd.xlane.f32.xlu0 %v1285_v62 }
 0x40f   : > { %v1278_v1 = vpop.xlane.xlu1 %1277 }
 0x410   : > { %v1281_v2 = vpop.xlane.xlu0 %1280  ;;  %2134 = vrcp.f32 %v1278_v1 }
 0x411   : > { %2136 = vrcp.f32 %v1281_v2 }
 0x413   : > { %v909_v3 = vpop.permute.xlu1 %908 }
 0x414   : > { %v927_v4 = vcombine.low %v903_v63, %v909_v3  ;;  %v928_v5 = vcombine.high %v903_v63, %v909_v3  ;;  %v906_v6 = vpop.permute.xlu0 %905 }
 0x415   : > { %v911_v7 = vcombine.low %v596_v41, %v906_v6  ;;  %v912_v8 = vcombine.high %v596_v41, %v906_v6 }
 0x416   : > { %v935_v9 = vrot.slane %v927_v4, %v2686_v35  ;;  %v942_v10 = vrot.slane %v928_v5, %v2686_v35 }
 0x417   : > { %v919_v11 = vrot.slane %v911_v7, %v2686_v35  ;;  %v926_v12 = vrot.slane %v912_v8, %v2686_v35 }
 0x419   : > { %v943_v13 = vcombine.low %v919_v11, %v935_v9  ;;  %v944_v14 = vcombine.high %v919_v11, %v935_v9  ;;  %v959_v15 = vcombine.low %v926_v12, %v942_v10  ;;  %v960_v16 = vcombine.high %v926_v12, %v942_v10 }
 0x41a   : > { %v2135_v36 = vpop.eup %2134 }
 0x41b   : > { %v951_v17 = vrot.slane %v943_v13, %v2689_v42  ;;  %v958_v18 = vrot.slane %v944_v14, %v2689_v42  ;;  %v967_v19 = vrot.slane %v959_v15, %v2689_v42  ;;  %v974_v20 = vrot.slane %v960_v16, %v2689_v42  ;;  %v2137_v39 = vpop.eup %2136 }
 0x41c   : > { %v1292_v45 = vmul.f32 %v2135_v36, %v2761_v49  ;;  %v1293_v46 = vmul.f32 %v2137_v39, %v2763_v50 }
 0x41d   : > { %v979_v21 = vcombine.low %v951_v17, %v958_v18  ;;  %v1894_v22 = vcombine.high %v951_v17, %v958_v18  ;;  %v995_v31 = vcombine.low %v967_v19, %v974_v20  ;;  %v1895_v23 = vcombine.high %v967_v19, %v974_v20 }
 0x41e   : > { %v1296_v55 = vpack.c.bf16 %v1292_v45, %v1292_v45  ;;  %v1297_v56 = vpack.c.bf16 %v1293_v46, %v1293_v46 }
 0x41f   : > { %v986_v24 = vrot.slane %v979_v21, %v2686_v35  ;;  %v994_v25 = vrot.slane %v1894_v22, %v2686_v35  ;;  %v1002_v26 = vrot.slane %v995_v31, %v2686_v35  ;;  %v1010_v27 = vrot.slane %v1895_v23, %v2686_v35 }
 0x421   : > { %v1011_v28 = vcombine.low %v986_v24, %v994_v25  ;;  %v1012_v29 = vcombine.high %v986_v24, %v994_v25  ;;  %v1027_v30 = vcombine.low %v1002_v26, %v1010_v27  ;;  %v1028_v32 = vcombine.high %v1002_v26, %v1010_v27 }
 0x423   : > { %v1019_v33 = vrot.slane %v1011_v28, %v2689_v42  ;;  %v1026_v34 = vrot.slane %v1012_v29, %v2689_v42  ;;  %v1035_v37 = vrot.slane %v1027_v30, %v2689_v42  ;;  %v1042_v38 = vrot.slane %v1028_v32, %v2689_v42  ;;  %v2124_v29 = vld [vmem:[#allocation8 + $0x30] sm:$0xff]  }
 0x425   : > { %v1043_v40 = vcombine.low %v1019_v33, %v1035_v37  ;;  %v1044_v41 = vcombine.high %v1019_v33, %v1035_v37  ;;  %v1045_v43 = vcombine.low %v1026_v34, %v1042_v38  ;;  %v1046_v44 = vcombine.high %v1026_v34, %v1042_v38 }
 0x427   : > { %v1047_v47 = vpack.c.bf16 %v1043_v40, %v1043_v40  ;;  %v1048_v48 = vpack.c.bf16 %v1044_v41, %v1044_v41  ;;  %v1049_v53 = vpack.c.bf16 %v1045_v43, %v1045_v43  ;;  %v1050_v54 = vpack.c.bf16 %v1046_v44, %v1046_v44  ;;  %v2125_v40 = vld [vmem:[#allocation8 + $0x38] sm:$0xff]  }
 0x429   : > { %v1305_v51 = vsel %vm1303_vm5, %v1047_v47, 0  ;;  %v1351_v52 = vsel %vm1303_vm5, %v1048_v48, 0  ;;  %v1397_v49 = vsel %vm1303_vm5, %v1049_v53, 0  ;;  %v1443_v50 = vsel %vm1303_vm5, %v1050_v54, 0 }
 0x42a   : > { %1991 = vmatpush3.bf16.msra.mxu1 %v1305_v51  ;;  %1997 = vmatpush3.bf16.msra.mxu0 %v1351_v52 }
 0x42b   : > { %2002 = vmatprep.subr.bf16.mxu1 %v2358_v0  ;;  %2008 = vmatprep.subr.bf16.mxu0 %v2358_v0 }
 0x42d   : > { %1993 = vmatmul.mubr.msk.bf16.vlgmr.msra.gmra.mrb[12].mxu1 %vm1051_vm2, %v1296_v55  ;;  %1999 = vmatmul.mubr.msk.bf16.vlgmr.msra.gmra.mrb[16].mxu0 %vm1051_vm2, %v1297_v56 }
 0x42e   : > { %2003 = vmatpush3.bf16.msra.mxu1 %v1397_v49  ;;  %2009 = vmatpush3.bf16.msra.mxu0 %v1443_v50 }
 0x42f   : > { %2004 = vmatprep.mubr.msk.bf16.mxu1 %vm2359_vm0, %v2358_v0  ;;  %2010 = vmatprep.mubr.msk.bf16.mxu0 %vm2359_vm0, %v2358_v0 }
 0x430   : > { %2014 = vmatprep.subr.bf16.mxu1 %v2358_v0 }
 0x444   : > { %v1284_v57 = vpop.xlane.xlu1 %1283 }
 0x445   : > { %2138 = vrcp.f32 %v1284_v57  ;;  %v1287_v58 = vpop.xlane.xlu0 %1286 }
 0x446   : > { %2140 = vrcp.f32 %v1287_v58 }
 0x44f   : > { %v2139_v61 = vpop.eup %2138 }
 0x450   : > { %v2141_v62 = vpop.eup %2140  ;;  %v1294_v63 = vmul.f32 %v2139_v61, %v2771_v59 }
 0x451   : > { %v1295_v1 = vmul.f32 %v2141_v62, %v2773_v60 }
 0x452   : > { %v1298_v2 = vpack.c.bf16 %v1294_v63, %v1294_v63 }
 0x453   : > { %v1299_v3 = vpack.c.bf16 %v1295_v1, %v1295_v1  ;;  %v1906_v1 = vld [vmem:[%s2898_s5 + $0x3] ss:$0 sm:$0xff] }
 0x454   : > { %2005 = vmatmul.mubr.msk.bf16.vlgmr.msra.gmra.mrb[16].mxu1 %vm1051_vm2, %v1298_v2 }
 0x455   : > { %2011 = vmatmul.mubr.msk.bf16.vlgmr.msra.gmra.mrb[20].mxu0 %vm1051_vm2, %v1299_v3  ;;  %2018 = vmatprep.mubr.msk.bf16.mxu1 %vm2359_vm0, %v2358_v0 }
 0x456   : > { %2015 = vmatpush3.bf16.msra.mxu1 %v2124_v29 }
 0x457   : > { %2016 = vmatprep.subr.bf16.mxu1 %v2358_v0 }
 0x45a   : > { %2017 = vmatpush3.bf16.msra.mxu1 %v2125_v40 }
 0x500   : > { %v1341_v4 = vpop.f32.mrb[12].mxu1  ;;  %v1387_v5 = vpop.f32.mrb[16].mxu0 }
 0x501   : > { %v1994_v6 = vpop.f32.mrb[13].mxu1  ;;  %v2000_v7 = vpop.f32.mrb[17].mxu0 }
 0x502   : > { %v1344_v8 = vpop.f32.mrb[14].mxu1  ;;  %v1390_v9 = vpop.f32.mrb[18].mxu0 }
 0x503   : > { %v1995_v10 = vpop.f32.mrb[15].mxu1  ;;  %v2001_v11 = vpop.f32.mrb[19].mxu0 }
 0x527   : > { %v1433_v59 = vpop.f32.mrb[16].mxu1 }
 0x528   : > { %v1485_v12 = vcombine.low %v1341_v4, %v1433_v59  ;;  %v1486_v60 = vcombine.high %v1341_v4, %v1433_v59  ;;  %v1479_v13 = vpop.f32.mrb[20].mxu0  ;;  %v2006_v14 = vpop.f32.mrb[17].mxu1 }
 0x529   : > { %v1501_v15 = vcombine.low %v1387_v5, %v1479_v13  ;;  %v1502_v16 = vcombine.high %v1387_v5, %v1479_v13  ;;  %v2012_v17 = vpop.f32.mrb[21].mxu0  ;;  %v1436_v18 = vpop.f32.mrb[18].mxu1 }
 0x52a   : > { %v1493_v19 = vrot.slane %v1485_v12, %v2686_v35  ;;  %v1500_v20 = vrot.slane %v1486_v60, %v2686_v35  ;;  %v1482_v21 = vpop.f32.mrb[22].mxu0  ;;  %v2007_v22 = vpop.f32.mrb[19].mxu1 }
 0x52b   : > { %v1509_v31 = vrot.slane %v1501_v15, %v2686_v35  ;;  %v1516_v23 = vrot.slane %v1502_v16, %v2686_v35  ;;  %v2013_v24 = vpop.f32.mrb[23].mxu0 }
 0x52d   : > { %v1517_v25 = vcombine.low %v1493_v19, %v1509_v31  ;;  %v1518_v26 = vcombine.high %v1493_v19, %v1509_v31  ;;  %v1533_v27 = vcombine.low %v1500_v20, %v1516_v23  ;;  %v1534_v28 = vcombine.high %v1500_v20, %v1516_v23 }
 0x52f   : > { %v1525_v30 = vrot.slane %v1517_v25, %v2689_v42  ;;  %v1532_v32 = vrot.slane %v1518_v26, %v2689_v42  ;;  %v1541_v33 = vrot.slane %v1533_v27, %v2689_v42  ;;  %v1548_v34 = vrot.slane %v1534_v28, %v2689_v42 }
 0x531   : > { %v1553_v36 = vcombine.low %v1525_v30, %v1532_v32  ;;  %v1904_v37 = vcombine.high %v1525_v30, %v1532_v32  ;;  %v1569_v38 = vcombine.low %v1541_v33, %v1548_v34  ;;  %v1905_v39 = vcombine.high %v1541_v33, %v1548_v34 }
 0x533   : > { %v1560_v41 = vrot.slane %v1553_v36, %v2686_v35  ;;  %v1568_v43 = vrot.slane %v1904_v37, %v2686_v35  ;;  %v1576_v44 = vrot.slane %v1569_v38, %v2686_v35  ;;  %v1584_v45 = vrot.slane %v1905_v39, %v2686_v35 }
 0x535   : > { %v1586_v46 = vcombine.high %v1560_v41, %v1568_v43  ;;  %v1602_v47 = vcombine.high %v1576_v44, %v1584_v45  ;;  %v1585_v48 = vcombine.low %v1560_v41, %v1568_v43  ;;  %v1601_v51 = vcombine.low %v1576_v44, %v1584_v45 }
 0x537   : > { %v1600_v0 = vrot.slane %v1586_v46, %v2689_v42  ;;  %v1616_v52 = vrot.slane %v1602_v47, %v2689_v42  ;;  %v1593_v53 = vrot.slane %v1585_v48, %v2689_v42  ;;  %v1609_v54 = vrot.slane %v1601_v51, %v2689_v42 }
 0x539   : > { %v1619_v55 = vcombine.low %v1600_v0, %v1616_v52  ;;  %v1618_v56 = vcombine.high %v1593_v53, %v1609_v54  ;;  %v1620_v49 = vcombine.high %v1600_v0, %v1616_v52  ;;  %v1617_v50 = vcombine.low %v1593_v53, %v1609_v54 }
 0x53b   : > { %1626 = vrot.lane.b32.xlu1 %v1619_v55, %s2366_s1  ;;  %1622 = vrot.lane.b32.xlu0 %v1618_v56, %s2367_s15 }
 0x53f   : > { %1630 = vrot.lane.b32.xlu1 %v1620_v49, %s2368_s20 }
 0x5ad   : > { %v1627_v35 = vpop.permute.xlu1 %1626  ;;  %v1623_v57 = vpop.permute.xlu0 %1622 }
 0x5ae   : > { %v1633_v58 = vsel %vm1051_vm2, %v1617_v50, %v1623_v57 }
 0x5af   : > { %v1635_v42 = vsel %vm1634_vm6, %v1633_v58, %v1627_v35 }
 0x5b1   : > { %v1631_v61 = vpop.permute.xlu1 %1630 }
 0x5b2   : > { %v1637_v62 = vsel %vm1636_vm7, %v1635_v42, %v1631_v61 }
 0x5b3   : > { %v1638_v63 = vpack.c.bf16 %v1637_v62, %v1637_v62 }
 0x5b5   : > { %2019 = vmatmul.mubr.msk.bf16.vlgmr.msra.gmra.mrb[20].mxu1 %vm435_vm1, %v1638_v63 }
 0x688   : > { %v1694_v2 = vpop.f32.mrb[20].mxu1 }
 0x689   : > { %v1695_v3 = vadd.f32 %v1906_v1, %v1694_v2  ;;  %v2020_v4 = vpop.f32.mrb[21].mxu1 }
 0x68a   : > { %v1697_v5 = vpop.f32.mrb[22].mxu1 }
 0x68b   : > { %v2021_v6 = vpop.f32.mrb[23].mxu1  ;;  %1700 = vst.msk [vmem:[%s380_s6] sm:$0xff] %vm435_vm1, %v1695_v3 }
 0x68c   : > { %2273 = shalt.err (!%p2270_p0)
}
 0x68d   : > { %s2274_s19 = scalar_lea.hbm %s2843_s26, 128  ;;  %s2278_s28 = scalar_lea.hbm %s2949_s10, 256 }
 0x68e   : > { %p2275_p11 = scmp.ne.s32.totalorder %s2843_s26, %s2274_s19  ;;  %p2279_p4 = scmp.lt.u32.totalorder %s2843_s26, %s2949_s10 }
 0x68f   : > { %p2280_p2 = scmp.lt.u32.totalorder %s2278_s28, %s2274_s19  ;;  %p2282_p10 = scmp.lt.u32.totalorder %s2274_s19, %s2843_s26 }
 0x690   : > { %p2276_p1 = pnand %p2275_p11, %p2950_p13 }
 0x691   : > { %p2281_p5 = por %p2280_p2, %p2279_p4 }
 0x692   : > { %p2277_p9 = pneg %p2276_p1 }
 0x693   : > { %p2283_p7 = por %p2282_p10, %p2281_p5 }
 0x695   : > { %p2284_p3 = pnand %p2283_p7, %p2277_p9 }
 0x697   : > { %2287 = shalt.err (!%p2284_p3)
}
 0x698   : > { %2032 = dma.vmem_to_hbm [thread:$0]  (%p2950_p13), %s2845_s18, 128, %s2843_s26, %s1702_s24  }
 0x699 PF: > { %s2951_s1 = sld [smem:[#allocation15_spill]]  ;;  %s2952_s15 = sld [smem:[#allocation21_spill]] }
 0x69a   : > { %s2953_s20 = sld [smem:[#allocation17_spill]] }
 0x69f   : > { %s1728_s3 = sand.u32 1, %s2951_s1   ;;  %p2954_p6 = scmp.ne.s32.totalorder %s2952_s15, 0 }
 0x6a0   : > { %p2955_p8 = scmp.ge.s32.totalorder %s2953_s20, 2  ;;  %s1729_s9 = scalar_lea.sflag [#allocation4], %s1728_s3 }
 0x6a2   : > { %p2049_p12 = pnand %p2955_p8, %p2954_p6 }
 0x6a4   : > { %2325 = dma.done.wait (!%p2049_p12), %s1729_s9, 128  }
 0x6a5   : > { %2327 = vsyncadd (!%p2049_p12), %s1729_s9, 4294967168  ;;  %s26_s26 = sadd.s32 1, %s2953_s20   ;;  %s2956_s17 = sld [smem:[#allocation19_spill]] }
 0x6a6   : > { %p23_p0 = scmp.ge.s32.totalorder %s26_s26, 4   ;;  %s2957_s24 = sld [smem:[#allocation16_spill]] }
 0x6a7   : > { %s2958_s25 = sld [smem:[#allocation18_spill]]  ;;  %s2959_s21 = smov %s2334_s22 }
 0x6a8   : > { %s2960_s22 = smov %s2338_s23  ;;  %25 = sbr.rel (!%p23_p0) target bundleno = 13 (0xd), region = 126 }
 0x6ab   : > { %s2961_s23 = smov %s2956_s17 }
 0x6af   :  { %1734 = vsyncpa [#allocation3], 1 }
 0x6b0   :  { %1736 = vsyncpa [#allocation3 + $0x1], 1 }
 0x6b1   :  { %1737 = vsyncpa [#allocation6], 1 }
 0x6b2   :  { %1739 = vsyncpa [#allocation6 + $0x1], 1 }
 0x6b3   :  { %1740 = vsyncpa [#allocation9], 1 }
 0x6b4   :  { %1741 = vsyncpa [#allocation4], 1 }
 0x6b5   :  { %1743 = vsyncpa [#allocation4 + $0x1], 1 }

</bundles_post_ra>
